<compile_context>
chip_gen: v6e
topology: v6e:2x2x1
jax: 0.10.0
libtpu: 0.0.40
codegen_flags: <defaults>
</compile_context>

<pallas_src>
import math

import jax
import jax.numpy as jnp
from jax.experimental import pallas as pl
from jax.experimental.pallas import tpu as pltpu


def _round_up(x, m):
    return (x + m - 1) // m * m


def _vmem_capacity_bytes():
    try:
        info = pltpu.get_tpu_info()
        cap = int(getattr(info, "vmem_capacity_bytes", 0) or 0)
        if cap > 0:
            return cap
    except Exception:
        pass
    return 64 << 20  # conservative fallback (v7x-sized VMEM)


def _make_arcface_kernel(scale, cos_m, sin_m, th, mm, easy_margin, ls_eps,
                         out_features, tile_c):
    def kernel(xn_ref, wt_ref, invn_ref, label_ref, out_ref, part_ref):
        j = pl.program_id(0)  # class-tile index (outer grid axis)

        # cosine = x_norm @ W_norm^T.  W arrives pre-transposed (D, tile_c); its
        # per-class inverse norm is applied post-matmul as a (1, tile_c) scale.
        cosine = jnp.dot(xn_ref[...], wt_ref[...],
                         preferred_element_type=jnp.float32)         # (tb, tc) f32
        cosine = cosine * invn_ref[...]

        tb, tc = cosine.shape
        col = jax.lax.broadcasted_iota(jnp.int32, (tb, tc), 1) + j * tile_c
        is_tgt = label_ref[...] == col                                # (tb, tc)

        if ls_eps > 0.0:
            # label smoothing touches every logit -> full-tile phi required
            sine = jnp.sqrt(jnp.maximum(1.0 - cosine * cosine, 0.0))
            phi = cosine * cos_m - sine * sin_m
            if easy_margin:
                phi = jnp.where(cosine > 0.0, phi, cosine)
            else:
                phi = jnp.where(cosine > th, phi, cosine - mm)
            one_hot = (1.0 - ls_eps) * is_tgt.astype(jnp.float32) \
                      + ls_eps / out_features
            out = (one_hot * phi + (1.0 - one_hot) * cosine) * scale
        else:
            # fast path: phi only matters for the (at most one) target column per
            # row -> compute sqrt/phi on a (tb, 1) column, not the whole tile.
            tgt_cos = jnp.sum(jnp.where(is_tgt, cosine, 0.0),
                              axis=-1, keepdims=True)                 # (tb, 1)
            tgt_sin = jnp.sqrt(jnp.maximum(1.0 - tgt_cos * tgt_cos, 0.0))
            tgt_phi = tgt_cos * cos_m - tgt_sin * sin_m
            if easy_margin:
                tgt_phi = jnp.where(tgt_cos > 0.0, tgt_phi, tgt_cos)
            else:
                tgt_phi = jnp.where(tgt_cos > th, tgt_phi, tgt_cos - mm)
            out = jnp.where(is_tgt, tgt_phi, cosine) * scale

        out_ref[...] = out.astype(out_ref.dtype)

        # fused cross-entropy partials, consolidated into ONE (1, tb, 3) store:
        #   col 0: per-tile row max   col 1: per-tile sum-exp   col 2: target logit
        valid = col < out_features
        row_max = jnp.max(jnp.where(valid, out, -jnp.inf),
                          axis=-1, keepdims=True)                     # (tb, 1)
        sum_exp = jnp.sum(jnp.exp(jnp.where(valid, out - row_max, -jnp.inf)),
                          axis=-1, keepdims=True)                     # (tb, 1)
        tgt_log = jnp.sum(jnp.where(is_tgt, out, 0.0),
                          axis=-1, keepdims=True)                     # (tb, 1)
        c3 = jax.lax.broadcasted_iota(jnp.int32, (tb, 3), 1)
        part = jnp.where(c3 == 0, row_max,
                         jnp.where(c3 == 1, sum_exp, tgt_log))        # (tb, 3)
        part_ref[...] = part[None]

    return kernel


def arc_margin_product(x, weight, label, *, scale=30.0, margin=0.5,
                       easy_margin=False, ls_eps=0.0, tile_c=None):
    """Forward of ArcMarginProduct. Returns (scaled logits, mean cross-entropy loss)."""
    B, D = x.shape
    C, D2 = weight.shape
    assert D == D2

    # --- constants (mirror the PyTorch module) -------------------------------
    cos_m = math.cos(margin)
    sin_m = math.sin(margin)
    th = math.cos(math.pi - margin)
    mm = math.sin(math.pi - margin) * margin

    # bf16 inputs stream / matmul in bf16 (f32 accumulation); f32 stays f32
    # (keeps the 1e-3 logit tolerance; bf16 streaming of f32 weights would not).
    compute_dtype = (jnp.bfloat16
                     if (x.dtype == jnp.bfloat16 and weight.dtype == jnp.bfloat16)
                     else jnp.float32)
    in_bytes = jnp.dtype(compute_dtype).itemsize

    # --- hoisted normalizations ----------------------------------------------
    xf = x.astype(jnp.float32)
    x_n = (xf * jax.lax.rsqrt(
        jnp.maximum(jnp.sum(xf * xf, axis=-1, keepdims=True), 1e-24))
           ).astype(compute_dtype)
    wf = weight.astype(jnp.float32)
    w_inv = jax.lax.rsqrt(jnp.maximum(jnp.sum(wf * wf, axis=-1), 1e-24))   # (C,)
    wt = weight.astype(compute_dtype).T                                    # (D, C)

    # --- batch tiling: class-tile OUTER, batch INNER --------------------------
    B_pad = _round_up(B, 8)
    if B_pad > 256:
        tile_b = 256
        B_pad = _round_up(B_pad, tile_b)
    else:
        tile_b = B_pad
    n_btiles = B_pad // tile_b

    # --- generation-aware class-tile sizing ------------------------------------
    vmem_cap = _vmem_capacity_bytes()          # 128 MiB v5e/v6e, 64 MiB v7x
    vmem_budget = int(vmem_cap * 0.6)

    def _vmem_est(tc):
        return (2 * (tile_b * D * in_bytes          # x block (double-buffered)
                     + D * tc * in_bytes            # W^T tile
                     + tc * 4                       # inv-norm tile
                     + tile_b * tc * 4              # logits tile
                     + tile_b * 4 * 4)              # CE partials + label
                + 8 * tile_b * tc * 4               # in-kernel f32/i32 temporaries
                + (2 << 20))                        # compiler-internal slack

    if tile_c is None:
        tile_c = 2048
    tile_c = max(256, min(_round_up(tile_c, 256), _round_up(C, 256)))
    while tile_c > 256 and _vmem_est(tile_c) > vmem_budget:
        tile_c = max(256, _round_up(tile_c // 2, 256))
    if tile_c == 256 and _vmem_est(tile_c) > vmem_budget:
        tile_c = 128
    # give v7x's two TensorCores at least one class tile each
    if C > 256 and _round_up(C, tile_c) // tile_c < 2:
        tile_c = max(256, _round_up(-(-C // 2), 256))

    C_pad = _round_up(C, tile_c)
    n_ctiles = C_pad // tile_c
    if C_pad != C:
        wt = jnp.pad(wt, ((0, 0), (0, C_pad - C)))
        w_inv = jnp.pad(w_inv, (0, C_pad - C))      # padded classes: inv_norm = 0
    w_inv = w_inv.reshape(1, C_pad)

    label2d = label.reshape(B, 1).astype(jnp.int32)
    if B_pad != B:
        x_n = jnp.pad(x_n, ((0, B_pad - B), (0, 0)))
        label2d = jnp.pad(label2d, ((0, B_pad - B), (0, 0)))

    kernel = _make_arcface_kernel(scale, cos_m, sin_m, th, mm, easy_margin,
                                  ls_eps, C, tile_c)

    out_shapes = (
        jax.ShapeDtypeStruct((B_pad, C_pad), jnp.float32),       # scaled logits
        jax.ShapeDtypeStruct((n_ctiles, B_pad, 3), jnp.float32), # CE partials
    )

    vmem_limit = int(min(max(2 * _vmem_est(tile_c), 32 << 20),
                         vmem_cap - (8 << 20)))

    logits_pad, part = pl.pallas_call(
        kernel,
        out_shape=out_shapes,
        grid_spec=pltpu.PrefetchScalarGridSpec(
            num_scalar_prefetch=0,
            grid=(n_ctiles, n_btiles),               # class outer, batch inner
            in_specs=[
                pl.BlockSpec((tile_b, D), lambda j, i: (i, 0)),   # normalized x
                pl.BlockSpec((D, tile_c), lambda j, i: (0, j)),   # W^T tile
                pl.BlockSpec((1, tile_c), lambda j, i: (0, j)),   # 1/||w|| tile
                pl.BlockSpec((tile_b, 1), lambda j, i: (i, 0)),   # labels
            ],
            out_specs=[
                pl.BlockSpec((tile_b, tile_c), lambda j, i: (i, j)),
                pl.BlockSpec((1, tile_b, 3), lambda j, i: (j, i, 0)),
            ],
        ),
        compiler_params=pltpu.CompilerParams(
            dimension_semantics=("parallel", "parallel"),
            vmem_limit_bytes=vmem_limit,
        ),
    )(x_n, wt, w_inv, label2d)

    logits = logits_pad[:B, :C]

    # --- combine tiny (T, B, 3) partials -> cross-entropy (mean reduction) ----
    # NOTE: the loss uses the hard target logit even when ls_eps > 0 (matches
    # nn.CrossEntropyLoss on the smoothed-logit output in the PyTorch module).
    part = part[:, :B, :]
    mx, se, tg = part[..., 0], part[..., 1], part[..., 2]        # (T, B)
    gmax = jnp.max(mx, axis=0)                                   # (B,)
    lse = gmax + jnp.log(jnp.sum(se * jnp.exp(mx - gmax[None, :]), axis=0))
    tgt = jnp.sum(tg, axis=0)                                    # (B,)
    loss = jnp.mean(lse - tgt)
    return logits, loss


def xavier_uniform(key, shape, dtype=jnp.float32):
    fan_out, fan_in = shape
    bound = math.sqrt(6.0 / (fan_in + fan_out))
    return jax.random.uniform(key, shape, dtype, minval=-bound, maxval=bound)


def _reference(x, weight, label, scale, margin, easy_margin, ls_eps):
    C = weight.shape[0]
    xn = x / jnp.maximum(jnp.linalg.norm(x, axis=1, keepdims=True), 1e-12)
    wn = weight / jnp.maximum(jnp.linalg.norm(weight, axis=1, keepdims=True), 1e-12)
    cos = xn @ wn.T
    sin = jnp.sqrt(jnp.maximum(1.0 - cos ** 2, 0.0))
    phi = cos * math.cos(margin) - sin * math.sin(margin)
    if easy_margin:
        phi = jnp.where(cos > 0.0, phi, cos)
    else:
        phi = jnp.where(cos > math.cos(math.pi - margin), phi,
                        cos - math.sin(math.pi - margin) * margin)
    oh = jax.nn.one_hot(label, C, dtype=jnp.float32)
    if ls_eps > 0:
        oh = (1.0 - ls_eps) * oh + ls_eps / C
    out = (oh * phi + (1.0 - oh) * cos) * scale
    lse = jax.scipy.special.logsumexp(out, axis=1)
    tgt = jnp.take_along_axis(out, label[:, None], axis=1)[:, 0]
    return out, jnp.mean(lse - tgt)


if __name__ == "__main__":
    # Small shapes consistent with the module (batch=16, fc_dim=768, classes=11014
    # in the original config, scaled down). C deliberately not a multiple of 128
    # to exercise the padded/masked class-tile path.
    B, D, C = 8, 128, 300
    scale, margin = 30.0, 0.5

    key = jax.random.PRNGKey(0)
    kx, kw, kl = jax.random.split(key, 3)

    x = jax.random.normal(kx, (B, D), dtype=jnp.float32)
    weight = xavier_uniform(kw, (C, D))                   # nn.Parameter(out, in)
    label = jax.random.randint(kl, (B,), 0, C, dtype=jnp.int32)

    for em, eps in ((False, 0.0), (True, 0.1)):
        logits, loss = arc_margin_product(x, weight, label, scale=scale,
                                          margin=margin, easy_margin=em,
                                          ls_eps=eps)
        jax.block_until_ready((logits, loss))
        ref, ref_loss = _reference(x, weight, label, scale, margin, em, eps)
        assert logits.shape == (B, C)
        assert jnp.max(jnp.abs(ref - logits)) < 1e-3, (em, eps)
        assert abs(float(loss) - float(ref_loss)) < 1e-3, (em, eps)

    print("KERNEL_OK")
</pallas_src>

<mosaic_0001>
module attributes {stable_mosaic.version = 11 : i64} {
  func.func @kernel(%arg0: i32, %arg1: i32, %arg2: memref<8x128xf32, #tpu.memory_space<vmem>>, %arg3: memref<128x256xf32, #tpu.memory_space<vmem>>, %arg4: memref<1x256xf32, #tpu.memory_space<vmem>>, %arg5: memref<8x1xi32, #tpu.memory_space<vmem>>, %arg6: memref<8x256xf32, #tpu.memory_space<vmem>>, %arg7: memref<1x8x3xf32, #tpu.memory_space<vmem>>) attributes {dimension_semantics = [#tpu.dimension_semantics<parallel>, #tpu.dimension_semantics<parallel>], iteration_bounds = array<i64: 2, 1>, scalar_prefetch = 0 : i64, scratch_operands = 0 : i64, tpu.core_type = #tpu.core_type<tc>, window_params = [{transform_indices = @transform_0, window_bounds = array<i64: 8, 128>}, {transform_indices = @transform_1, window_bounds = array<i64: 128, 256>}, {transform_indices = @transform_2, window_bounds = array<i64: 1, 256>}, {transform_indices = @transform_3, window_bounds = array<i64: 8, 1>}, {transform_indices = @transform_4, window_bounds = array<i64: 8, 256>}, {transform_indices = @transform_5, window_bounds = array<i64: 1, 8, 3>}]} {
    %c0 = arith.constant 0 : index
    %c0_0 = arith.constant 0 : index
    %0 = vector.load %arg2[%c0, %c0_0] : memref<8x128xf32, #tpu.memory_space<vmem>>, vector<8x128xf32>
    %c0_1 = arith.constant 0 : index
    %c0_2 = arith.constant 0 : index
    %1 = vector.load %arg3[%c0_1, %c0_2] : memref<128x256xf32, #tpu.memory_space<vmem>>, vector<128x256xf32>
    %cst = arith.constant dense<0.000000e+00> : vector<8x256xf32>
    %2 = tpu.matmul %0, %1, %cst {dimension_numbers = #tpu.dot_dimension_numbers<[1], [0], [0], [1], [0, 0, 1, 1], [], []>} : vector<8x128xf32>, vector<128x256xf32>, vector<8x256xf32> -> vector<8x256xf32>
    %c0_3 = arith.constant 0 : index
    %c0_4 = arith.constant 0 : index
    %3 = vector.load %arg4[%c0_3, %c0_4] : memref<1x256xf32, #tpu.memory_space<vmem>>, vector<1x256xf32>
    %4 = vector.broadcast %3 : vector<1x256xf32> to vector<8x256xf32>
    %5 = arith.mulf %2, %4 : vector<8x256xf32>
    %6 = tpu.iota {dimensions = array<i32: 1>} : vector<8x256xi32>
    %c256_i32 = arith.constant 256 : i32
    %7 = arith.muli %arg0, %c256_i32 : i32
    %8 = vector.broadcast %7 : i32 to vector<8x256xi32>
    %9 = arith.addi %6, %8 : vector<8x256xi32>
    %c0_5 = arith.constant 0 : index
    %c0_6 = arith.constant 0 : index
    %10 = vector.load %arg5[%c0_5, %c0_6] : memref<8x1xi32, #tpu.memory_space<vmem>>, vector<8x1xi32>
    %11 = vector.broadcast %10 : vector<8x1xi32> to vector<8x256xi32>
    %12 = arith.cmpi eq, %11, %9 : vector<8x256xi32>
    %cst_7 = arith.constant 0.000000e+00 : f32
    %13 = vector.broadcast %cst_7 : f32 to vector<8x256xf32>
    %14 = arith.select %12, %5, %13 : vector<8x256xi1>, vector<8x256xf32>
    %cst_8 = arith.constant dense<0.000000e+00> : vector<8xf32>
    %15 = vector.multi_reduction <add>, %14, %cst_8 [1] : vector<8x256xf32> to vector<8xf32>
    %16 = vector.shape_cast %15 : vector<8xf32> to vector<8x1xf32>
    %17 = arith.mulf %16, %16 : vector<8x1xf32>
    %cst_9 = arith.constant 1.000000e+00 : f32
    %18 = vector.broadcast %cst_9 : f32 to vector<8x1xf32>
    %19 = arith.subf %18, %17 : vector<8x1xf32>
    %cst_10 = arith.constant 0.000000e+00 : f32
    %20 = vector.broadcast %cst_10 : f32 to vector<8x1xf32>
    %21 = arith.maximumf %19, %20 : vector<8x1xf32>
    %22 = math.sqrt %21 : vector<8x1xf32>
    %cst_11 = arith.constant 0.87758255 : f32
    %23 = vector.broadcast %cst_11 : f32 to vector<8x1xf32>
    %24 = arith.mulf %16, %23 : vector<8x1xf32>
    %cst_12 = arith.constant 0.47942555 : f32
    %25 = vector.broadcast %cst_12 : f32 to vector<8x1xf32>
    %26 = arith.mulf %22, %25 : vector<8x1xf32>
    %27 = arith.subf %24, %26 : vector<8x1xf32>
    %cst_13 = arith.constant -0.87758255 : f32
    %28 = vector.broadcast %cst_13 : f32 to vector<8x1xf32>
    %29 = arith.cmpf ogt, %16, %28 : vector<8x1xf32>
    %cst_14 = arith.constant 0.239712775 : f32
    %30 = vector.broadcast %cst_14 : f32 to vector<8x1xf32>
    %31 = arith.subf %16, %30 : vector<8x1xf32>
    %32 = arith.select %29, %27, %31 : vector<8x1xi1>, vector<8x1xf32>
    %33 = vector.shape_cast %32 : vector<8x1xf32> to vector<8x1xf32>
    %34 = vector.broadcast %33 : vector<8x1xf32> to vector<8x256xf32>
    %35 = arith.select %12, %34, %5 : vector<8x256xi1>, vector<8x256xf32>
    %cst_15 = arith.constant 3.000000e+01 : f32
    %36 = vector.broadcast %cst_15 : f32 to vector<8x256xf32>
    %37 = arith.mulf %35, %36 : vector<8x256xf32>
    %c0_16 = arith.constant 0 : index
    %c0_17 = arith.constant 0 : index
    %38 = vector.load %arg6[%c0_16, %c0_17] : memref<8x256xf32, #tpu.memory_space<vmem>>, vector<8x256xf32>
    tpu.vector_store %arg6[%c0_16, %c0_17], %37 {strides = array<i32>} : memref<8x256xf32, #tpu.memory_space<vmem>>, vector<8x256xf32>,
    %c300_i32 = arith.constant 300 : i32
    %39 = vector.broadcast %c300_i32 : i32 to vector<8x256xi32>
    %40 = arith.cmpi slt, %9, %39 : vector<8x256xi32>
    %cst_18 = arith.constant 0xFF800000 : f32
    %41 = vector.broadcast %cst_18 : f32 to vector<8x256xf32>
    %42 = arith.select %40, %37, %41 : vector<8x256xi1>, vector<8x256xf32>
    %cst_19 = arith.constant dense<0xFF800000> : vector<8xf32>
    %43 = vector.multi_reduction <maximumf>, %42, %cst_19 [1] : vector<8x256xf32> to vector<8xf32>
    %44 = vector.shape_cast %43 : vector<8xf32> to vector<8x1xf32>
    %45 = vector.broadcast %44 : vector<8x1xf32> to vector<8x256xf32>
    %46 = arith.subf %37, %45 : vector<8x256xf32>
    %cst_20 = arith.constant 0xFF800000 : f32
    %47 = vector.broadcast %cst_20 : f32 to vector<8x256xf32>
    %48 = arith.select %40, %46, %47 : vector<8x256xi1>, vector<8x256xf32>
    %49 = math.exp %48 : vector<8x256xf32>
    %cst_21 = arith.constant dense<0.000000e+00> : vector<8xf32>
    %50 = vector.multi_reduction <add>, %49, %cst_21 [1] : vector<8x256xf32> to vector<8xf32>
    %51 = vector.shape_cast %50 : vector<8xf32> to vector<8x1xf32>
    %cst_22 = arith.constant 0.000000e+00 : f32
    %52 = vector.broadcast %cst_22 : f32 to vector<8x256xf32>
    %53 = arith.select %12, %37, %52 : vector<8x256xi1>, vector<8x256xf32>
    %cst_23 = arith.constant dense<0.000000e+00> : vector<8xf32>
    %54 = vector.multi_reduction <add>, %53, %cst_23 [1] : vector<8x256xf32> to vector<8xf32>
    %55 = vector.shape_cast %54 : vector<8xf32> to vector<8x1xf32>
    %56 = tpu.iota {dimensions = array<i32: 1>} : vector<8x3xi32>
    %c0_i32 = arith.constant 0 : i32
    %57 = vector.broadcast %c0_i32 : i32 to vector<8x3xi32>
    %58 = arith.cmpi eq, %56, %57 : vector<8x3xi32>
    %c1_i32 = arith.constant 1 : i32
    %59 = vector.broadcast %c1_i32 : i32 to vector<8x3xi32>
    %60 = arith.cmpi eq, %56, %59 : vector<8x3xi32>
    %61 = vector.shape_cast %51 : vector<8x1xf32> to vector<8x1xf32>
    %62 = vector.broadcast %61 : vector<8x1xf32> to vector<8x3xf32>
    %63 = vector.shape_cast %55 : vector<8x1xf32> to vector<8x1xf32>
    %64 = vector.broadcast %63 : vector<8x1xf32> to vector<8x3xf32>
    %65 = arith.select %60, %62, %64 : vector<8x3xi1>, vector<8x3xf32>
    %66 = vector.shape_cast %44 : vector<8x1xf32> to vector<8x1xf32>
    %67 = vector.broadcast %66 : vector<8x1xf32> to vector<8x3xf32>
    %68 = arith.select %58, %67, %65 : vector<8x3xi1>, vector<8x3xf32>
    %69 = vector.shape_cast %68 : vector<8x3xf32> to vector<1x8x3xf32>
    %c0_24 = arith.constant 0 : index
    %c0_25 = arith.constant 0 : index
    %c0_26 = arith.constant 0 : index
    %70 = vector.load %arg7[%c0_24, %c0_25, %c0_26] : memref<1x8x3xf32, #tpu.memory_space<vmem>>, vector<1x8x3xf32>
    tpu.vector_store %arg7[%c0_24, %c0_25, %c0_26], %69 {strides = array<i32>} : memref<1x8x3xf32, #tpu.memory_space<vmem>>, vector<1x8x3xf32>,
    return
  }
  func.func @transform_0(%arg0: i32, %arg1: i32) -> (i32, i32) {
    %c0_i32 = arith.constant 0 : i32
    %c0_i32_0 = arith.constant 0 : i32
    return %arg1, %c0_i32 : i32, i32
  }
  func.func @transform_1(%arg0: i32, %arg1: i32) -> (i32, i32) {
    %c0_i32 = arith.constant 0 : i32
    %c0_i32_0 = arith.constant 0 : i32
    return %c0_i32, %arg0 : i32, i32
  }
  func.func @transform_2(%arg0: i32, %arg1: i32) -> (i32, i32) {
    %c0_i32 = arith.constant 0 : i32
    %c0_i32_0 = arith.constant 0 : i32
    return %c0_i32, %arg0 : i32, i32
  }
  func.func @transform_3(%arg0: i32, %arg1: i32) -> (i32, i32) {
    %c0_i32 = arith.constant 0 : i32
    %c0_i32_0 = arith.constant 0 : i32
    return %arg1, %c0_i32 : i32, i32
  }
  func.func @transform_4(%arg0: i32, %arg1: i32) -> (i32, i32) {
    %c0_i32 = arith.constant 0 : i32
    return %arg1, %arg0 : i32, i32
  }
  func.func @transform_5(%arg0: i32, %arg1: i32) -> (i32, i32, i32) {
    %c0_i32 = arith.constant 0 : i32
    %c0_i32_0 = arith.constant 0 : i32
    return %arg0, %arg1, %c0_i32 : i32, i32, i32
  }
}

</mosaic_0001>

<bundles_post_ra>
// kernel: tpu_custom_call.1
= control target key start
LH: loop header
LB: loop body
LE: loop exit
PB: predicated region body
PF: predicated region fallthrough
CT: control target
= control target key end

     0   :  { %11 = vsyncpa [#allocation3], 0  ;;  %s1136_s0 = inlined_call_operand.vmem [shape: f32[8,128], index: 0, kind: input, shape index: {}]   ;;  %s1137_s1 = inlined_call_operand.hbm [shape: f32[128,512], index: 1, kind: input, shape index: {}]   ;;  %s1138_s2 = inlined_call_operand.vmem [shape: f32[1,512], index: 2, kind: input, shape index: {}]   ;;  %s1139_s3 = inlined_call_operand.vmem [shape: s32[8,1], index: 3, kind: input, shape index: {}]   ;;  %s1140_s4 = inlined_call_operand.hbm [shape: f32[8,512], index: 4, kind: output, shape index: {0}]   ;;  %s1141_s5 = inlined_call_operand.vmem [shape: f32[2,8,3], index: 5, kind: output, shape index: {1}]  }
   0x1   :  { %13 = vsyncpa [#allocation3 + $0x1], 0 }
   0x2   :  { %14 = vsyncpa [#allocation4], 0 }
   0x3   :  { %16 = vsyncpa [#allocation4 + $0x1], 0  ;;  %s940_s18 = smov 0   ;;  %s942_s19 = smov 0  }
   0x4   :  { %s944_s20 = smov 0   ;;  %s946_s21 = smov 0  }
   0x5   :  { %s948_s22 = smov 0   ;;  %s950_s23 = smov 0  }
   0x6 LB: > { %s696_s24 = sadd.s32 4294967295, %s901_s23   ;;  %s697_s25 = sadd.s32 4294967294, %s901_s23   ;;  %s901_s23 = sphi %s950_s23, %s22_s23   ;;  %s897_s22 = sphi %s948_s22, %s1152_s22   ;;  %s893_s21 = sphi %s946_s21, %s1151_s21   ;;  %s889_s20 = sphi %s944_s20, %s1150_s20   ;;  %s885_s19 = sphi %s942_s19, %s1149_s19   ;;  %s881_s18 = sphi %s940_s18, %s1148_s18  }
   0x7   : > { %s34_s26 = sadd.s32 1, %s897_s22  ;;  %s67_s27 = sadd.s32 1, %s889_s20 }
   0x8   : > { %p36_p0 = scmp.ge.s32.totalorder %s34_s26, 2  ;;  %p74_p1 = scmp.ne.s32.totalorder %s889_s20, %s885_s19 }
   0x9   : > { %p75_p2 = scmp.eq.s32.totalorder %s901_s23, 0  ;;  %p80_p3 = scmp.ne.s32.totalorder %s885_s19, %s881_s18 }
   0xa   : > { %s1154_s26 = smov (%p36_p0, %s34_s26), 0  ;;  %p81_p5 = scmp.eq.s32.totalorder %s696_s24, 0 }
   0xb   : > { %p981_p4 = por %p75_p2, %p74_p1  ;;  %s64_s29 = ssub.s32 %s897_s22, %s1154_s26 }
   0xc   : > { %p158_p6 = scmp.eq.s32.totalorder %s696_s24, 1  ;;  %p65_p7 = scmp.eq.s32.totalorder %s64_s29, 0 }
   0xd   : > { %p987_p8 = por %p81_p5, %p80_p3  ;;  %p164_p10 = scmp.eq.s32.totalorder %s697_s25, 1 }
   0xe   : > { %p991_p9 = por %p158_p6, %p74_p1  ;;  %p731_p13 = scmp.lt.s32.totalorder %s901_s23, 2 }
   0xf   : > { %s996_s7 = scalar_select %p65_p7, %s889_s20, %s67_s27  }
  0x10   : > { %p998_p11 = por %p164_p10, %p80_p3  ;;  %s226_s9 = sand.u32 1, %s889_s20  }
  0x11   : > { %s702_s10 = sshll.u32 %s226_s9, 8  ;;  %s717_s11 = sshll.u32 %s897_s22, 8 }
  0x12   : > { %s236_s14 = scalar_lea.hbm %s1137_s1, %s717_s11  ;;  %s230_s15 = scalar_lea.vmem [#allocation2], %s702_s10 }
  0x13   : > { %s237_s16 = sshll.u32 %s230_s15, 4  ;;  %p1011_p0 = pnand %p731_p13, %p981_p4  ;;  %s238_s16 = int_to_ptr.vmem [resolvable:$true] %s237_s16 }
  0x14   : > { %s227_s24 = scalar_lea.sflag [#allocation3], %s226_s9  ;;  %s806_s25 = scalar_lea.vmem %s238_s16, 4096 }
  0x15   : > { %p795_p1 = pneg %p1011_p0  ;;  %p807_p2 = scmp.ne.s32.totalorder %s238_s16, %s806_s25 }
  0x16   : > { %s903_s27 = smov [#allocation2]  }
  0x17   : > { %p809_p3 = pnand %p807_p2, %p795_p1  ;;  %s811_s29 = sshll.u32 %s903_s27, 4  ;;  %s812_s29 = int_to_ptr.vmem [resolvable:$false] %s811_s29 }
  0x18   : > { %s813_s11 = scalar_lea.vmem %s812_s29, 8192  ;;  %p814_p6 = scmp.lt.s32.totalorder %s238_s16, %s812_s29 }
  0x19   : > { %p810_p5 = pneg %p809_p3  ;;  %p815_p7 = scmp.lt.s32.totalorder %s813_s11, %s806_s25 }
  0x1b   : > { %p816_p10 = por %p815_p7, %p814_p6 }
  0x1d   : > { %p817_p12 = pnand %p816_p10, %p810_p5 }
  0x1f   : > { %820 = shalt.err (!%p817_p12)
}
  0x20   : > { %s904_s28 = smov 512   ;;  %s905_s9 = smov 256  }
  0x21   : > { %s906_s10 = smov 16   ;;  %p705_p4 = scmp.ge.s32.totalorder %s901_s23, 1 }
  0x22   : > { %726 = dma.hbm_to_vmem [thread:$0]  (!%p1011_p0), %s236_s14, 4096, %s238_s16, %s227_s24, %s904_s28, %s905_s9, %s906_s10  }
  0x23   : > { %p253_p13 = scmp.lt.s32.totalorder %s901_s23, 3 }
  0x25   : > { %p254_p1 = pnand %p705_p4, %p253_p13 }
  0x26   : > { %s1022_s12 = sand.u32 (!%p254_p1), 1, %s885_s19  }
  0x27   : > { %257 = sbr.rel (%p254_p1) target bundleno = 757 (0x2f5), region = 36  ;;  %s706_s13 = sshll.u32 (!%p254_p1), %s1022_s12, 8 }
  0x28   : > { %s260_s15 = scalar_lea.sflag (!%p254_p1), [#allocation3], %s1022_s12  ;;  %s1026_s25 = scalar_lea.vmem (!%p254_p1), [#allocation2], %s706_s13 }
  0x2c   : > { %872 = dma.done.wait (%p987_p8), %s260_s15, 4096  }
  0x2d   : > { %874 = vsyncadd (%p987_p8), %s260_s15, 4294963200  ;;  %v907_v0 = vmov 0.0   ;;  %v908_v1 = vmov 0   ;;  %v363_v2 = vld [vmem:[%s1026_s25 + $0xf8] sm:$0xff]  ;;  %v362_v3 = vld [vmem:[%s1026_s25 + $0xf0] sm:$0xff]  ;;  %s708_s24 = sshll.u32 %s893_s21, 1  ;;  %v437_v36 = vlaneseq }
  0x2e   : > { %428 = vmatprep.mubr.f32.mxu0 %v907_v0  ;;  %786 = vset.pattern.permute.xlu0 %v908_v1  ;;  %v361_v4 = vld [vmem:[%s1026_s25 + $0xe8] sm:$0xff]  ;;  %v360_v5 = vld [vmem:[%s1026_s25 + $0xe0] sm:$0xff]  ;;  %v359_v6 = vld [vmem:[%s1026_s25 + $0xd8] sm:$0xff]  ;;  %p315_p8 = scmp.lt.s32.totalorder %s708_s24, 3  ;;  %s710_s28 = sshll.u32 %s893_s21, 8 }
  0x2f   : > { %364 = vmatprep.subr.mxu0 %v363_v2  ;;  %v358_v7 = vld [vmem:[%s1026_s25 + $0xd0] sm:$0xff]  ;;  %v357_v8 = vld [vmem:[%s1026_s25 + $0xc8] sm:$0xff]  ;;  %v356_v9 = vld [vmem:[%s1026_s25 + $0xc0] sm:$0xff]  ;;  %v438_v37 = vshrl.u32 %v437_v36, 7  ;;  %v1071_v38 = vand.u32 127, %v437_v36  ;;  %v453_v42 = vstv %s710_s28  ;;  %s707_s9 = sshll.u32 %s1022_s12, 4 }
  0x30   : > { %365 = vmatpush1.msra.mxu0 %v362_v3  ;;  %v355_v10 = vld [vmem:[%s1026_s25 + $0xb8] sm:$0xff]  ;;  %v354_v11 = vld [vmem:[%s1026_s25 + $0xb0] sm:$0xff]  ;;  %v353_v12 = vld [vmem:[%s1026_s25 + $0xa8] sm:$0xff]  ;;  %s1156_s24 = smov (!%p315_p8, %s708_s24), 3  ;;  %s299_s10 = scalar_lea.vmem [#allocation5], %s707_s9 }
  0x31   : > { %366 = vmatprep.subr.mxu0 %v361_v4  ;;  %v352_v13 = vld [vmem:[%s1026_s25 + $0xa0] sm:$0xff]  ;;  %v351_v14 = vld [vmem:[%s1026_s25 + $0x98] sm:$0xff]  ;;  %v350_v15 = vld [vmem:[%s1026_s25 + $0x90] sm:$0xff]  ;;  %s317_s11 = scalar_lea.vmem %s1138_s2, %s1156_s24  ;;  %v439_v39 = vsub.s32 0, %v438_v37  ;;  %v451_v41 = vadd.s32 128, %v1071_v38  ;;  %v443_v43 = vsub.s32 1, %v438_v37  ;;  %v454_v45 = vadd.s32 %v453_v42, %v1071_v38 }
  0x32   : > { %367 = vmatpush1.msra.mxu0 %v360_v5  ;;  %v456_v16 = vld [vmem:[%s1139_s3] sm:$0xff]  ;;  %v349_v17 = vld [vmem:[%s1026_s25 + $0x88] sm:$0xff]  ;;  %v347_v19 = vld [vmem:[%s1026_s25 + $0x78] sm:$0xff]  ;;  %s542_s30 = sshll.u32 %s299_s10, 4  ;;  %s519_s14 = scalar_lea.sflag [#allocation4], %s1022_s12  ;;  %s543_s30 = int_to_ptr.vmem [resolvable:$true] %s542_s30 }
  0x33   : > { %368 = vmatprep.subr.mxu0 %v359_v6  ;;  %458 = vperm.xlu0 %786, %v456_v16   ;;  %v348_v18 = vld [vmem:[%s1026_s25 + $0x80] sm:$0xff]  ;;  %v346_v20 = vld [vmem:[%s1026_s25 + $0x70] sm:$0xff]  ;;  %v345_v21 = vld [vmem:[%s1026_s25 + $0x68] sm:$0xff]  ;;  %v455_v46 = vadd.s32 %v453_v42, %v451_v41  ;;  %vm489_vm5 = vcmp.lt.s32.totalorder %v454_v45, 300  ;;  %s821_s16 = scalar_lea.vmem %s543_s30, 256  ;;  %s909_s17 = smov [#allocation5]  }
  0x34   : > { %369 = vmatpush1.msra.mxu0 %v358_v7  ;;  %v344_v22 = vld [vmem:[%s1026_s25 + $0x60] sm:$0xff]  ;;  %v343_v23 = vld [vmem:[%s1026_s25 + $0x58] sm:$0xff]  ;;  %v342_v24 = vld [vmem:[%s1026_s25 + $0x50] sm:$0xff]  ;;  %p822_p12 = scmp.ne.s32.totalorder %s543_s30, %s821_s16  ;;  %s825_s24 = sshll.u32 %s909_s17, 4  ;;  %s826_s24 = int_to_ptr.vmem [resolvable:$false] %s825_s24 }
  0x35   : > { %370 = vmatprep.subr.mxu0 %v357_v8  ;;  %v341_v25 = vld [vmem:[%s1026_s25 + $0x48] sm:$0xff]  ;;  %v340_v26 = vld [vmem:[%s1026_s25 + $0x40] sm:$0xff]  ;;  %v339_v27 = vld [vmem:[%s1026_s25 + $0x38] sm:$0xff]  ;;  %vm490_vm6 = vcmp.lt.s32.totalorder %v455_v46, 300  ;;  %s827_s27 = scalar_lea.vmem %s826_s24, 512  ;;  %p828_p3 = scmp.lt.s32.totalorder %s543_s30, %s826_s24 }
  0x36   : > { %371 = vmatpush1.msra.mxu0 %v356_v9  ;;  %v338_v28 = vld [vmem:[%s1026_s25 + $0x30] sm:$0xff]  ;;  %v337_v29 = vld [vmem:[%s1026_s25 + $0x28] sm:$0xff]  ;;  %v336_v30 = vld [vmem:[%s1026_s25 + $0x20] sm:$0xff]  ;;  %p823_p0 = pnand %p822_p12, %p991_p9  ;;  %p829_p5 = scmp.lt.s32.totalorder %s827_s27, %s821_s16 }
  0x37   : > { %372 = vmatprep.subr.mxu0 %v355_v10  ;;  %v335_v31 = vld [vmem:[%s1026_s25 + $0x18] sm:$0xff]  ;;  %v334_v32 = vld [vmem:[%s1026_s25 + $0x10] sm:$0xff]  ;;  %v333_v33 = vld [vmem:[%s1026_s25 + $0x8] sm:$0xff] }
  0x38   : > { %373 = vmatpush1.msra.mxu0 %v354_v11  ;;  %v332_v34 = vld [vmem:[%s1026_s25] sm:$0xff]  ;;  %s540_s25 = scalar_lea.hbm %s1140_s4, %s710_s28  ;;  %p824_p2 = pneg %p823_p0 }
  0x39   : > { %374 = vmatprep.subr.mxu0 %v353_v12  ;;  %v331_v35 = vld [vmem:[%s1136_s0] sm:$0xff]  ;;  %p830_p6 = por %p829_p5, %p828_p3 }
  0x3a   : > { %375 = vmatpush1.msra.mxu0 %v352_v13  ;;  %v435_v40 = vld [vmem:[%s317_s11] sm:$0x3] }
  0x3b   : > { %376 = vmatprep.subr.mxu0 %v351_v14  ;;  %v440_v44 = vrot.slane %v435_v40, %v439_v39  ;;  %v444_v48 = vrot.slane %v435_v40, %v443_v43  ;;  %p831_p7 = pnand %p830_p6, %p824_p2 }
  0x3c   : > { %377 = vmatpush1.msra.mxu0 %v350_v15 }
  0x3d   : > { %378 = vmatprep.subr.mxu0 %v349_v17 }
  0x3e   : > { %379 = vmatpush1.msra.mxu0 %v348_v18 }
  0x3f   : > { %380 = vmatprep.subr.mxu0 %v347_v19 }
  0x40   : > { %381 = vmatpush1.msra.mxu0 %v346_v20 }
  0x41   : > { %382 = vmatprep.subr.mxu0 %v345_v21 }
  0x42   : > { %383 = vmatpush1.msra.mxu0 %v344_v22 }
  0x43   : > { %384 = vmatprep.subr.mxu0 %v343_v23 }
  0x44   : > { %385 = vmatpush1.msra.mxu0 %v342_v24 }
  0x45   : > { %386 = vmatprep.subr.mxu0 %v341_v25 }
  0x46   : > { %387 = vmatpush1.msra.mxu0 %v340_v26 }
  0x47   : > { %388 = vmatprep.subr.mxu0 %v339_v27 }
  0x48   : > { %389 = vmatpush1.msra.mxu0 %v338_v28 }
  0x49   : > { %390 = vmatprep.subr.mxu0 %v337_v29 }
  0x4a   : > { %391 = vmatpush1.msra.mxu0 %v336_v30 }
  0x4b   : > { %392 = vmatprep.subr.mxu0 %v335_v31 }
  0x4c   : > { %393 = vmatpush1.msra.mxu0 %v334_v32 }
  0x4d   : > { %394 = vmatprep.subr.mxu0 %v333_v33 }
  0x4e   : > { %395 = vmatpush1.msra.mxu0 %v332_v34 }
  0x4f   : > { %429 = vmatmul.mubr.f32.vlgmr.msra.gmra.mxu0 %v331_v35 }
  0xae   : > { %v459_v47 = vpop.permute.xlu0 %458 }
  0xaf   : > { %vm460_vm0 = vcmp.eq.s32.totalorder %v459_v47, %v454_v45  ;;  %vm461_vm1 = vcmp.eq.s32.totalorder %v459_v47, %v455_v46 }
 0x10f   : > { %v430_v49 = vpop.f32.mrf.mxu0 }
 0x110   : > { %v447_v50 = vmul.f32 %v440_v44, %v430_v49 }
 0x111   : > { %v432_v51 = vpop.f32.mrf.mxu0 }
 0x112   : > { %v448_v52 = vmul.f32 %v444_v48, %v432_v51  ;;  %v462_v53 = vsel %vm460_vm0, %v447_v50, 0.0 }
 0x114   : > { %v463_v54 = vsel %vm461_vm1, %v448_v52, 0.0 }
 0x115   : > { %v464_v55 = vadd.f32 %v463_v54, %v462_v53 }
 0x117   : > { %465 = vadd.xlane.f32.xlu0 %v464_v55 }
 0x1a0   : > { %v466_v56 = vpop.xlane.xlu0 %465 }
 0x1a1   : > { %v467_v57 = vmul.f32 %v466_v56, %v466_v56  ;;  %v477_v1 = vmul.f32 0.87758255, %v466_v56  ;;  %v711_v4 = vadd.f32 -0.23971277, %v466_v56  ;;  %vm480_vm4 = vcmp.gt.f32.partialorder %v466_v56, -0.87758255 }
 0x1a3   : > { %v468_v58 = vsub.f32 1.0, %v467_v57 }
 0x1a5   : > { %v469_v59 = vmax.f32 %v468_v58, 0.0 }
 0x1a7   : > { %787 = vrsqrt.f32 %v469_v59  ;;  %vm472_vm2 = vcmp.eq.f32.partialorder %v469_v59, inf  ;;  %v475_v62 = vand.u32 2147483648, %v469_v59  ;;  %vm474_vm3 = vcmp.eq.f32.partialorder %v469_v59, 0.0 }
 0x1b4   : > { %v788_v60 = vpop.eup %787 }
 0x1b5   : > { %v471_v61 = vmul.f32 %v788_v60, %v469_v59 }
 0x1b7   : > { %v473_v63 = vsel %vm472_vm2, %v469_v59, %v471_v61 }
 0x1b8   : > { %v476_v0 = vsel %vm474_vm3, %v475_v62, %v473_v63 }
 0x1b9   : > { %v478_v2 = vmul.f32 0.47942555, %v476_v0 }
 0x1bb   : > { %v479_v3 = vsub.f32 %v477_v1, %v478_v2 }
 0x1bd   : > { %v482_v5 = vsel %vm480_vm4, %v479_v3, %v711_v4 }
 0x1be   : > { %v483_v6 = vsel %vm460_vm0, %v482_v5, %v447_v50  ;;  %v484_v7 = vsel %vm461_vm1, %v482_v5, %v448_v52 }
 0x1bf   : > { %v485_v8 = vmul.f32 30.0, %v483_v6  ;;  %v486_v9 = vmul.f32 30.0, %v484_v7 }
 0x1c1   : > { %v491_v10 = vsel %vm489_vm5, %v485_v8, -inf  ;;  %v492_v11 = vsel %vm490_vm6, %v486_v9, -inf  ;;  %487 = vst [vmem:[%s299_s10] sm:$0xff] %v485_v8  ;;  %488 = vst [vmem:[%s299_s10 + $0x8] sm:$0xff] %v486_v9  ;;  %v507_v23 = vsel %vm460_vm0, %v485_v8, 0.0  ;;  %v508_v24 = vsel %vm461_vm1, %v486_v9, 0.0 }
 0x1c2   : > { %v493_v12 = vmax.f32 %v491_v10, %v492_v11  ;;  %v509_v25 = vadd.f32 %v508_v24, %v507_v23 }
 0x1c4   : > { %494 = vmax.xlane.f32.xlu1 %v493_v12 }
 0x24d   : > { %v495_v13 = vpop.xlane.xlu1 %494 }
 0x24e   : > { %v496_v14 = vsub.f32 %v485_v8, %v495_v13  ;;  %v497_v15 = vsub.f32 %v486_v9, %v495_v13 }
 0x250   : > { %v498_v16 = vsel %vm489_vm5, %v496_v14, -inf  ;;  %v499_v17 = vsel %vm490_vm6, %v497_v15, -inf }
 0x251   : > { %v500_v18 = vmul.f32 1.442695, %v498_v16  ;;  %v502_v19 = vmul.f32 1.442695, %v499_v17 }
 0x253   : > { %789 = vpow2.f32 %v500_v18 }
 0x254   : > { %791 = vpow2.f32 %v502_v19 }
 0x260   : > { %v790_v20 = vpop.eup %789 }
 0x261   : > { %v792_v21 = vpop.eup %791 }
 0x262   : > { %v504_v22 = vadd.f32 %v792_v21, %v790_v20 }
 0x264   : > { %505 = vadd.xlane.f32.xlu1 %v504_v22 }
 0x268   : > { %510 = vadd.xlane.f32.xlu1 %v509_v25 }
 0x269   : > { %834 = shalt.err (!%p831_p7)
}
 0x26a   : > { %s835_s29 = scalar_lea.hbm %s540_s25, 256  ;;  %s839_s28 = scalar_lea.hbm %s1140_s4, 512 }
 0x26b   : > { %p836_p10 = scmp.ne.s32.totalorder %s540_s25, %s835_s29  ;;  %p840_p1 = scmp.lt.s32.totalorder %s540_s25, %s1140_s4 }
 0x26c   : > { %p841_p8 = scmp.lt.s32.totalorder %s839_s28, %s835_s29 }
 0x26d   : > { %p837_p4 = pnand %p836_p10, %p991_p9 }
 0x26e   : > { %p842_p12 = por %p841_p8, %p840_p1 }
 0x26f   : > { %p838_p13 = pneg %p837_p4 }
 0x271   : > { %p843_p0 = pnand %p842_p12, %p838_p13 }
 0x273   : > { %846 = shalt.err (!%p843_p0)
}
 0x274   : > { %721 = dma.vmem_to_hbm [thread:$0]  (%p991_p9), %s543_s30, 256, %s540_s25, %s519_s14   ;;  %vm513_vm7 = vcmp.eq.s32.totalorder %v1071_v38, 1  ;;  %vm512_vm8 = vcmp.eq.s32.totalorder %v1071_v38, 0  ;;  %vm516_vm9 = vcmask 23552  }
 0x275   : > { %p324_p2 = scmp.lt.s32.totalorder %s893_s21, 1 }
 0x277   : > { %s1158_s21 = smov (!%p324_p2, %s893_s21), 1 }
 0x278   : > { %s709_s13 = sshll.u32 %s1158_s21, 3 }
 0x279   : > { %s330_s17 = scalar_lea.vmem %s1141_s5, %s709_s13 }
 0x2ed   : > { %v506_v26 = vpop.xlane.xlu1 %505 }
 0x2f1   : > { %v511_v27 = vpop.xlane.xlu1 %510 }
 0x2f2   : > { %v514_v28 = vsel %vm513_vm7, %v506_v26, %v511_v27 }
 0x2f3   : > { %v515_v29 = vsel %vm512_vm8, %v495_v13, %v514_v28 }
 0x2f4   : > { %517 = vst.msk [vmem:[%s330_s17] sm:$0xff] %vm516_vm9, %v515_v29 }
 0x2f5 PF: > { %s557_s6 = sand.u32 1, %s881_s18   ;;  %p1147_p9 = scmp.ge.s32.totalorder %s901_s23, 2 }
 0x2f6   : > { %s558_s21 = scalar_lea.sflag [#allocation4], %s557_s6 }
 0x2f7   : > { %p728_p3 = pnand %p1147_p9, %p998_p11 }
 0x2f9   : > { %p729_p5 = pneg %p728_p3 }
 0x2fb   : > { %876 = dma.done.wait (%p729_p5), %s558_s21, 256  }
 0x2fc   : > { %878 = vsyncadd (%p729_p5), %s558_s21, 4294967040  ;;  %s22_s23 = sadd.s32 1, %s901_s23   ;;  %s1148_s18 = smov %s885_s19 }
 0x2fd   : > { %p19_p6 = scmp.ge.s32.totalorder %s22_s23, 4   ;;  %s1149_s19 = smov %s889_s20 }
 0x2fe   : > { %s1150_s20 = smov %s996_s7  ;;  %s1151_s21 = smov %s897_s22 }
 0x2ff   : > { %s1152_s22 = smov %s1154_s26  ;;  %21 = sbr.rel (!%p19_p6) target bundleno = 6 (0x6), region = 102 }
 0x304   :  { %573 = vsyncpa [#allocation3], 1 }
 0x305   :  { %575 = vsyncpa [#allocation3 + $0x1], 1 }
 0x306   :  { %576 = vsyncpa [#allocation4], 1 }
 0x307   :  { %578 = vsyncpa [#allocation4 + $0x1], 1 }

</bundles_post_ra>
